<compile_context>
chip_gen: v7x
topology: tpu7x:2x2x1
jax: 0.10.0
libtpu: 0.0.40
codegen_flags: <defaults>
</compile_context>

<pallas_src>
import functools

import jax
import jax.numpy as jnp
from jax import lax
from jax.experimental import pallas as pl
from jax.experimental.pallas import tpu as pltpu


# ------------------------------- fused kernel -------------------------------

def _cross_attn_kernel(*refs, num_heads, head_dim, scale, qkv_bias):
    """Fused CrossAttention forward for one batch element.

    refs layout (no bias):   x, y, wq_t, wkv_t, wproj_t, bproj, out
    refs layout (with bias): x, y, wq_t, wkv_t, wproj_t, bproj, bq, bkv, out
    """
    if qkv_bias:
        (x_ref, y_ref, wq_ref, wkv_ref, wproj_ref, bproj_ref,
         bq_ref, bkv_ref, o_ref) = refs
    else:
        (x_ref, y_ref, wq_ref, wkv_ref, wproj_ref, bproj_ref, o_ref) = refs
        bq_ref = bkv_ref = None

    x = x_ref[0].astype(jnp.float32)            # (Nq, C)
    y = y_ref[0].astype(jnp.float32)            # (Nk, C)

    # ---- projections (f32 accumulation on the MXU) ----
    q = jnp.dot(x, wq_ref[...], preferred_element_type=jnp.float32)     # (Nq, C)
    if bq_ref is not None:
        q = q + bq_ref[...]
    kv = jnp.dot(y, wkv_ref[...], preferred_element_type=jnp.float32)   # (Nk, 2C)
    if bkv_ref is not None:
        kv = kv + bkv_ref[...]

    C = q.shape[-1]
    k = kv[:, :C]                               # (Nk, C)
    v = kv[:, C:]                               # (Nk, C)

    # Fold the softmax scale into q once (one VPU mul over (Nq, C)).
    q = q * scale

    # ---- per-head attention (static Python loop; head count is small) ----
    D = head_dim
    head_outs = []
    for h in range(num_heads):
        sl = slice(h * D, (h + 1) * D)
        qh, kh, vh = q[:, sl], k[:, sl], v[:, sl]            # (N, D)
        # q @ k^T via dot_general contracting on D (no explicit transpose).
        s = lax.dot_general(qh, kh, (((1,), (1,)), ((), ())),
                            preferred_element_type=jnp.float32)   # (Nq, Nk)
        s = s - jnp.max(s, axis=-1, keepdims=True)
        p = jnp.exp(s)
        p = p * pl.reciprocal(jnp.sum(p, axis=-1, keepdims=True), approx=True)
        head_outs.append(jnp.dot(p, vh, preferred_element_type=jnp.float32))

    attn_out = jnp.concatenate(head_outs, axis=-1)            # (Nq, C), lane-dense

    # ---- output projection + bias, single lane-dense store ----
    out = jnp.dot(attn_out, wproj_ref[...], preferred_element_type=jnp.float32)
    out = out + bproj_ref[...]
    o_ref[0] = out.astype(o_ref.dtype)


def cross_attention_forward(params, x, y, num_heads, qkv_bias=False):
    """x: (B, Nq, C) queries, y: (B, Nk, C) keys/values.  sr_ratio == 1."""
    B, Nq, C = x.shape
    _, Nk, _ = y.shape
    assert C % num_heads == 0
    D = C // num_heads
    scale = D ** (-0.5)

    kern = functools.partial(
        _cross_attn_kernel,
        num_heads=num_heads, head_dim=D, scale=scale, qkv_bias=qkv_bias)

    inputs = [x, y, params["wq_t"], params["wkv_t"], params["wproj_t"],
              params["bproj"]]
    in_specs = [
        pl.BlockSpec((1, Nq, C), lambda b: (b, 0, 0)),
        pl.BlockSpec((1, Nk, C), lambda b: (b, 0, 0)),
        pl.BlockSpec((C, C), lambda b: (0, 0)),
        pl.BlockSpec((C, 2 * C), lambda b: (0, 0)),
        pl.BlockSpec((C, C), lambda b: (0, 0)),
        pl.BlockSpec((1, C), lambda b: (0, 0)),
    ]
    if qkv_bias:
        inputs += [params["bq"], params["bkv"]]
        in_specs += [pl.BlockSpec((1, C), lambda b: (0, 0)),
                     pl.BlockSpec((1, 2 * C), lambda b: (0, 0))]

    return pl.pallas_call(
        kern,
        out_shape=jax.ShapeDtypeStruct((B, Nq, C), x.dtype),
        grid=(B,),
        in_specs=in_specs,
        out_specs=pl.BlockSpec((1, Nq, C), lambda b: (b, 0, 0)),
        compiler_params=pltpu.CompilerParams(
            dimension_semantics=("parallel",)),
    )(*inputs)


# ---------------------------------- params ----------------------------------

def init_params(key, dim, qkv_bias=False):
    """trunc_normal(std=0.02) Linear weights, zero biases — mirrors PyTorch.

    Weights are stored ALREADY TRANSPOSED as (C_in, C_out) and the proj bias
    pre-broadcast to (1, C), so the per-call path does no layout work.
    """
    k1, k2, k3 = jax.random.split(key, 3)
    std = 0.02

    def trunc(k, shape):  # (out, in) like torch, then transpose once here
        return std * jax.random.truncated_normal(k, -2.0, 2.0, shape, jnp.float32)

    params = {
        "wq_t": trunc(k1, (dim, dim)).T,            # (C_in, C_out)
        "wkv_t": trunc(k2, (2 * dim, dim)).T,       # (C_in, 2*C_out)
        "wproj_t": trunc(k3, (dim, dim)).T,         # (C_in, C_out)
        "bproj": jnp.zeros((1, dim), jnp.float32),
    }
    if qkv_bias:
        params["bq"] = jnp.zeros((1, dim), jnp.float32)
        params["bkv"] = jnp.zeros((1, 2 * dim), jnp.float32)
    return params


# --------------------------------- reference ---------------------------------

def cross_attention_reference(params, x, y, num_heads, qkv_bias=False):
    B, Nq, C = x.shape
    _, Nk, _ = y.shape
    D = C // num_heads
    scale = D ** (-0.5)
    q = x @ params["wq_t"]
    kv = y @ params["wkv_t"]
    if qkv_bias:
        q = q + params["bq"]
        kv = kv + params["bkv"]
    q = q.reshape(B, Nq, num_heads, D).transpose(0, 2, 1, 3)
    kv = kv.reshape(B, Nk, 2, num_heads, D).transpose(2, 0, 3, 1, 4)
    k, v = kv[0], kv[1]
    attn = jnp.einsum("bhqd,bhkd->bhqk", q, k) * scale
    attn = jax.nn.softmax(attn, axis=-1)
    o = jnp.einsum("bhqk,bhkd->bhqd", attn, v).transpose(0, 2, 1, 3).reshape(B, Nq, C)
    return o @ params["wproj_t"] + params["bproj"]


# ----------------------------------- main ------------------------------------

if __name__ == "__main__":
    B, Nq, Nk, C, num_heads = 2, 16, 16, 32, 4   # head_dim = 8

    key = jax.random.PRNGKey(0)
    kx, ky, kp = jax.random.split(key, 3)
    x = jax.random.normal(kx, (B, Nq, C), jnp.float32)
    y = jax.random.normal(ky, (B, Nk, C), jnp.float32)
    params = init_params(kp, C, qkv_bias=False)

    out = cross_attention_forward(params, x, y, num_heads, qkv_bias=False)
    out = jax.block_until_ready(out)

    ref = cross_attention_reference(params, x, y, num_heads, qkv_bias=False)
    assert out.shape == (B, Nq, C)
    # approx reciprocal in the softmax denominator -> slightly relaxed tolerance
    assert jnp.allclose(out, ref, atol=1e-3, rtol=1e-3), "mismatch vs reference"

    print("KERNEL_OK")
</pallas_src>

<mosaic_0001>
module attributes {stable_mosaic.version = 11 : i64} {
  func.func @_cross_attn_kernel(%arg0: i32, %arg1: memref<1x16x32xf32, #tpu.memory_space<vmem>>, %arg2: memref<1x16x32xf32, #tpu.memory_space<vmem>>, %arg3: memref<32x32xf32, #tpu.memory_space<vmem>>, %arg4: memref<32x64xf32, #tpu.memory_space<vmem>>, %arg5: memref<32x32xf32, #tpu.memory_space<vmem>>, %arg6: memref<1x32xf32, #tpu.memory_space<vmem>>, %arg7: memref<1x16x32xf32, #tpu.memory_space<vmem>>) attributes {dimension_semantics = [#tpu.dimension_semantics<parallel>], iteration_bounds = array<i64: 2>, scalar_prefetch = 0 : i64, scratch_operands = 0 : i64, tpu.core_type = #tpu.core_type<tc>, window_params = [{transform_indices = @transform_0, window_bounds = array<i64: 1, 16, 32>}, {transform_indices = @transform_1, window_bounds = array<i64: 1, 16, 32>}, {pipeline_mode = #tpu.pipeline_mode<synchronous>, transform_indices = @transform_2, window_bounds = array<i64: 32, 32>}, {pipeline_mode = #tpu.pipeline_mode<synchronous>, transform_indices = @transform_3, window_bounds = array<i64: 32, 64>}, {pipeline_mode = #tpu.pipeline_mode<synchronous>, transform_indices = @transform_4, window_bounds = array<i64: 32, 32>}, {pipeline_mode = #tpu.pipeline_mode<synchronous>, transform_indices = @transform_5, window_bounds = array<i64: 1, 32>}, {transform_indices = @transform_6, window_bounds = array<i64: 1, 16, 32>}]} {
    %c0 = arith.constant 0 : index
    %c0_0 = arith.constant 0 : index
    %c0_1 = arith.constant 0 : index
    %0 = vector.load %arg1[%c0, %c0_0, %c0_1] : memref<1x16x32xf32, #tpu.memory_space<vmem>>, vector<1x16x32xf32>
    %1 = vector.shape_cast %0 : vector<1x16x32xf32> to vector<16x32xf32>
    %c0_2 = arith.constant 0 : index
    %c0_3 = arith.constant 0 : index
    %c0_4 = arith.constant 0 : index
    %2 = vector.load %arg2[%c0_2, %c0_3, %c0_4] : memref<1x16x32xf32, #tpu.memory_space<vmem>>, vector<1x16x32xf32>
    %3 = vector.shape_cast %2 : vector<1x16x32xf32> to vector<16x32xf32>
    %c0_5 = arith.constant 0 : index
    %c0_6 = arith.constant 0 : index
    %4 = vector.load %arg3[%c0_5, %c0_6] : memref<32x32xf32, #tpu.memory_space<vmem>>, vector<32x32xf32>
    %cst = arith.constant dense<0.000000e+00> : vector<16x32xf32>
    %5 = tpu.matmul %1, %4, %cst {dimension_numbers = #tpu.dot_dimension_numbers<[1], [0], [0], [1], [0, 0, 1, 1], [], []>} : vector<16x32xf32>, vector<32x32xf32>, vector<16x32xf32> -> vector<16x32xf32>
    %c0_7 = arith.constant 0 : index
    %c0_8 = arith.constant 0 : index
    %6 = vector.load %arg4[%c0_7, %c0_8] : memref<32x64xf32, #tpu.memory_space<vmem>>, vector<32x64xf32>
    %cst_9 = arith.constant dense<0.000000e+00> : vector<16x64xf32>
    %7 = tpu.matmul %3, %6, %cst_9 {dimension_numbers = #tpu.dot_dimension_numbers<[1], [0], [0], [1], [0, 0, 1, 1], [], []>} : vector<16x32xf32>, vector<32x64xf32>, vector<16x64xf32> -> vector<16x64xf32>
    %8 = vector.extract_strided_slice %7 {offsets = [0, 0], sizes = [16, 32], strides = [1, 1]} : vector<16x64xf32> to vector<16x32xf32>
    %9 = vector.extract_strided_slice %7 {offsets = [0, 32], sizes = [16, 32], strides = [1, 1]} : vector<16x64xf32> to vector<16x32xf32>
    %cst_10 = arith.constant 0.353553385 : f32
    %10 = vector.broadcast %cst_10 : f32 to vector<16x32xf32>
    %11 = arith.mulf %5, %10 : vector<16x32xf32>
    %12 = vector.extract_strided_slice %11 {offsets = [0, 0], sizes = [16, 8], strides = [1, 1]} : vector<16x32xf32> to vector<16x8xf32>
    %13 = vector.extract_strided_slice %8 {offsets = [0, 0], sizes = [16, 8], strides = [1, 1]} : vector<16x32xf32> to vector<16x8xf32>
    %14 = vector.extract_strided_slice %9 {offsets = [0, 0], sizes = [16, 8], strides = [1, 1]} : vector<16x32xf32> to vector<16x8xf32>
    %cst_11 = arith.constant dense<0.000000e+00> : vector<16x16xf32>
    %15 = tpu.matmul %12, %13, %cst_11 {dimension_numbers = #tpu.dot_dimension_numbers<[1], [1], [0], [0], [0, 0, 1, 0], [], []>} : vector<16x8xf32>, vector<16x8xf32>, vector<16x16xf32> -> vector<16x16xf32>
    %cst_12 = arith.constant dense<0xFF800000> : vector<16xf32>
    %16 = vector.multi_reduction <maximumf>, %15, %cst_12 [1] : vector<16x16xf32> to vector<16xf32>
    %17 = vector.shape_cast %16 : vector<16xf32> to vector<16x1xf32>
    %18 = vector.broadcast %17 : vector<16x1xf32> to vector<16x16xf32>
    %19 = arith.subf %15, %18 : vector<16x16xf32>
    %20 = math.exp %19 : vector<16x16xf32>
    %cst_13 = arith.constant dense<0.000000e+00> : vector<16xf32>
    %21 = vector.multi_reduction <add>, %20, %cst_13 [1] : vector<16x16xf32> to vector<16xf32>
    %22 = vector.shape_cast %21 : vector<16xf32> to vector<16x1xf32>
    %23 = tpu.reciprocal %22 {approx = true} : vector<16x1xf32> -> vector<16x1xf32>
    %24 = vector.broadcast %23 : vector<16x1xf32> to vector<16x16xf32>
    %25 = arith.mulf %20, %24 : vector<16x16xf32>
    %cst_14 = arith.constant dense<0.000000e+00> : vector<16x8xf32>
    %26 = tpu.matmul %25, %14, %cst_14 {dimension_numbers = #tpu.dot_dimension_numbers<[1], [0], [0], [1], [0, 0, 1, 1], [], []>} : vector<16x16xf32>, vector<16x8xf32>, vector<16x8xf32> -> vector<16x8xf32>
    %27 = vector.extract_strided_slice %11 {offsets = [0, 8], sizes = [16, 8], strides = [1, 1]} : vector<16x32xf32> to vector<16x8xf32>
    %28 = vector.extract_strided_slice %8 {offsets = [0, 8], sizes = [16, 8], strides = [1, 1]} : vector<16x32xf32> to vector<16x8xf32>
    %29 = vector.extract_strided_slice %9 {offsets = [0, 8], sizes = [16, 8], strides = [1, 1]} : vector<16x32xf32> to vector<16x8xf32>
    %cst_15 = arith.constant dense<0.000000e+00> : vector<16x16xf32>
    %30 = tpu.matmul %27, %28, %cst_15 {dimension_numbers = #tpu.dot_dimension_numbers<[1], [1], [0], [0], [0, 0, 1, 0], [], []>} : vector<16x8xf32>, vector<16x8xf32>, vector<16x16xf32> -> vector<16x16xf32>
    %cst_16 = arith.constant dense<0xFF800000> : vector<16xf32>
    %31 = vector.multi_reduction <maximumf>, %30, %cst_16 [1] : vector<16x16xf32> to vector<16xf32>
    %32 = vector.shape_cast %31 : vector<16xf32> to vector<16x1xf32>
    %33 = vector.broadcast %32 : vector<16x1xf32> to vector<16x16xf32>
    %34 = arith.subf %30, %33 : vector<16x16xf32>
    %35 = math.exp %34 : vector<16x16xf32>
    %cst_17 = arith.constant dense<0.000000e+00> : vector<16xf32>
    %36 = vector.multi_reduction <add>, %35, %cst_17 [1] : vector<16x16xf32> to vector<16xf32>
    %37 = vector.shape_cast %36 : vector<16xf32> to vector<16x1xf32>
    %38 = tpu.reciprocal %37 {approx = true} : vector<16x1xf32> -> vector<16x1xf32>
    %39 = vector.broadcast %38 : vector<16x1xf32> to vector<16x16xf32>
    %40 = arith.mulf %35, %39 : vector<16x16xf32>
    %cst_18 = arith.constant dense<0.000000e+00> : vector<16x8xf32>
    %41 = tpu.matmul %40, %29, %cst_18 {dimension_numbers = #tpu.dot_dimension_numbers<[1], [0], [0], [1], [0, 0, 1, 1], [], []>} : vector<16x16xf32>, vector<16x8xf32>, vector<16x8xf32> -> vector<16x8xf32>
    %42 = vector.extract_strided_slice %11 {offsets = [0, 16], sizes = [16, 8], strides = [1, 1]} : vector<16x32xf32> to vector<16x8xf32>
    %43 = vector.extract_strided_slice %8 {offsets = [0, 16], sizes = [16, 8], strides = [1, 1]} : vector<16x32xf32> to vector<16x8xf32>
    %44 = vector.extract_strided_slice %9 {offsets = [0, 16], sizes = [16, 8], strides = [1, 1]} : vector<16x32xf32> to vector<16x8xf32>
    %cst_19 = arith.constant dense<0.000000e+00> : vector<16x16xf32>
    %45 = tpu.matmul %42, %43, %cst_19 {dimension_numbers = #tpu.dot_dimension_numbers<[1], [1], [0], [0], [0, 0, 1, 0], [], []>} : vector<16x8xf32>, vector<16x8xf32>, vector<16x16xf32> -> vector<16x16xf32>
    %cst_20 = arith.constant dense<0xFF800000> : vector<16xf32>
    %46 = vector.multi_reduction <maximumf>, %45, %cst_20 [1] : vector<16x16xf32> to vector<16xf32>
    %47 = vector.shape_cast %46 : vector<16xf32> to vector<16x1xf32>
    %48 = vector.broadcast %47 : vector<16x1xf32> to vector<16x16xf32>
    %49 = arith.subf %45, %48 : vector<16x16xf32>
    %50 = math.exp %49 : vector<16x16xf32>
    %cst_21 = arith.constant dense<0.000000e+00> : vector<16xf32>
    %51 = vector.multi_reduction <add>, %50, %cst_21 [1] : vector<16x16xf32> to vector<16xf32>
    %52 = vector.shape_cast %51 : vector<16xf32> to vector<16x1xf32>
    %53 = tpu.reciprocal %52 {approx = true} : vector<16x1xf32> -> vector<16x1xf32>
    %54 = vector.broadcast %53 : vector<16x1xf32> to vector<16x16xf32>
    %55 = arith.mulf %50, %54 : vector<16x16xf32>
    %cst_22 = arith.constant dense<0.000000e+00> : vector<16x8xf32>
    %56 = tpu.matmul %55, %44, %cst_22 {dimension_numbers = #tpu.dot_dimension_numbers<[1], [0], [0], [1], [0, 0, 1, 1], [], []>} : vector<16x16xf32>, vector<16x8xf32>, vector<16x8xf32> -> vector<16x8xf32>
    %57 = vector.extract_strided_slice %11 {offsets = [0, 24], sizes = [16, 8], strides = [1, 1]} : vector<16x32xf32> to vector<16x8xf32>
    %58 = vector.extract_strided_slice %8 {offsets = [0, 24], sizes = [16, 8], strides = [1, 1]} : vector<16x32xf32> to vector<16x8xf32>
    %59 = vector.extract_strided_slice %9 {offsets = [0, 24], sizes = [16, 8], strides = [1, 1]} : vector<16x32xf32> to vector<16x8xf32>
    %cst_23 = arith.constant dense<0.000000e+00> : vector<16x16xf32>
    %60 = tpu.matmul %57, %58, %cst_23 {dimension_numbers = #tpu.dot_dimension_numbers<[1], [1], [0], [0], [0, 0, 1, 0], [], []>} : vector<16x8xf32>, vector<16x8xf32>, vector<16x16xf32> -> vector<16x16xf32>
    %cst_24 = arith.constant dense<0xFF800000> : vector<16xf32>
    %61 = vector.multi_reduction <maximumf>, %60, %cst_24 [1] : vector<16x16xf32> to vector<16xf32>
    %62 = vector.shape_cast %61 : vector<16xf32> to vector<16x1xf32>
    %63 = vector.broadcast %62 : vector<16x1xf32> to vector<16x16xf32>
    %64 = arith.subf %60, %63 : vector<16x16xf32>
    %65 = math.exp %64 : vector<16x16xf32>
    %cst_25 = arith.constant dense<0.000000e+00> : vector<16xf32>
    %66 = vector.multi_reduction <add>, %65, %cst_25 [1] : vector<16x16xf32> to vector<16xf32>
    %67 = vector.shape_cast %66 : vector<16xf32> to vector<16x1xf32>
    %68 = tpu.reciprocal %67 {approx = true} : vector<16x1xf32> -> vector<16x1xf32>
    %69 = vector.broadcast %68 : vector<16x1xf32> to vector<16x16xf32>
    %70 = arith.mulf %65, %69 : vector<16x16xf32>
    %cst_26 = arith.constant dense<0.000000e+00> : vector<16x8xf32>
    %71 = tpu.matmul %70, %59, %cst_26 {dimension_numbers = #tpu.dot_dimension_numbers<[1], [0], [0], [1], [0, 0, 1, 1], [], []>} : vector<16x16xf32>, vector<16x8xf32>, vector<16x8xf32> -> vector<16x8xf32>
    %72 = tpu.concatenate %26, %41, %56, %71 in 1 : vector<16x8xf32>, vector<16x8xf32>, vector<16x8xf32>, vector<16x8xf32> -> vector<16x32xf32>
    %c0_27 = arith.constant 0 : index
    %c0_28 = arith.constant 0 : index
    %73 = vector.load %arg5[%c0_27, %c0_28] : memref<32x32xf32, #tpu.memory_space<vmem>>, vector<32x32xf32>
    %cst_29 = arith.constant dense<0.000000e+00> : vector<16x32xf32>
    %74 = tpu.matmul %72, %73, %cst_29 {dimension_numbers = #tpu.dot_dimension_numbers<[1], [0], [0], [1], [0, 0, 1, 1], [], []>} : vector<16x32xf32>, vector<32x32xf32>, vector<16x32xf32> -> vector<16x32xf32>
    %c0_30 = arith.constant 0 : index
    %c0_31 = arith.constant 0 : index
    %75 = vector.load %arg6[%c0_30, %c0_31] : memref<1x32xf32, #tpu.memory_space<vmem>>, vector<1x32xf32>
    %76 = vector.broadcast %75 : vector<1x32xf32> to vector<16x32xf32>
    %77 = arith.addf %74, %76 : vector<16x32xf32>
    %c0_32 = arith.constant 0 : index
    %c0_33 = arith.constant 0 : index
    %c0_34 = arith.constant 0 : index
    %78 = vector.load %arg7[%c0_32, %c0_33, %c0_34] : memref<1x16x32xf32, #tpu.memory_space<vmem>>, vector<1x16x32xf32>
    %79 = vector.shape_cast %78 : vector<1x16x32xf32> to vector<16x32xf32>
    %80 = vector.shape_cast %77 : vector<16x32xf32> to vector<1x16x32xf32>
    tpu.vector_store %arg7[%c0_32, %c0_33, %c0_34], %80 {strides = array<i32>} : memref<1x16x32xf32, #tpu.memory_space<vmem>>, vector<1x16x32xf32>,
    return
  }
  func.func @transform_0(%arg0: i32) -> (i32, i32, i32) {
    %c0_i32 = arith.constant 0 : i32
    %c0_i32_0 = arith.constant 0 : i32
    %c0_i32_1 = arith.constant 0 : i32
    return %arg0, %c0_i32, %c0_i32_0 : i32, i32, i32
  }
  func.func @transform_1(%arg0: i32) -> (i32, i32, i32) {
    %c0_i32 = arith.constant 0 : i32
    %c0_i32_0 = arith.constant 0 : i32
    %c0_i32_1 = arith.constant 0 : i32
    return %arg0, %c0_i32, %c0_i32_0 : i32, i32, i32
  }
  func.func @transform_2(%arg0: i32) -> (i32, i32) {
    %c0_i32 = arith.constant 0 : i32
    %c0_i32_0 = arith.constant 0 : i32
    %c0_i32_1 = arith.constant 0 : i32
    return %c0_i32, %c0_i32_0 : i32, i32
  }
  func.func @transform_3(%arg0: i32) -> (i32, i32) {
    %c0_i32 = arith.constant 0 : i32
    %c0_i32_0 = arith.constant 0 : i32
    %c0_i32_1 = arith.constant 0 : i32
    return %c0_i32, %c0_i32_0 : i32, i32
  }
  func.func @transform_4(%arg0: i32) -> (i32, i32) {
    %c0_i32 = arith.constant 0 : i32
    %c0_i32_0 = arith.constant 0 : i32
    %c0_i32_1 = arith.constant 0 : i32
    return %c0_i32, %c0_i32_0 : i32, i32
  }
  func.func @transform_5(%arg0: i32) -> (i32, i32) {
    %c0_i32 = arith.constant 0 : i32
    %c0_i32_0 = arith.constant 0 : i32
    %c0_i32_1 = arith.constant 0 : i32
    return %c0_i32, %c0_i32_0 : i32, i32
  }
  func.func @transform_6(%arg0: i32) -> (i32, i32, i32) {
    %c0_i32 = arith.constant 0 : i32
    %c0_i32_0 = arith.constant 0 : i32
    %c0_i32_1 = arith.constant 0 : i32
    return %arg0, %c0_i32, %c0_i32_0 : i32, i32, i32
  }
}

</mosaic_0001>

<bundles_post_ra>
// kernel: tpu_custom_call.1
= control target key start
LH: loop header
LB: loop body
LE: loop exit
PB: predicated region body
PF: predicated region fallthrough
CT: control target
= control target key end

     0   :  { %s2721_s0 = inlined_call_operand.hbm [shape: f32[2,16,32], index: 0, kind: input, shape index: {}]   ;;  %s2722_s1 = inlined_call_operand.hbm [shape: f32[2,16,32], index: 1, kind: input, shape index: {}]   ;;  %s2723_s2 = inlined_call_operand.hbm [shape: f32[32,32], index: 2, kind: input, shape index: {}]   ;;  %s2724_s3 = inlined_call_operand.hbm [shape: f32[32,64], index: 3, kind: input, shape index: {}]   ;;  %s2725_s4 = inlined_call_operand.hbm [shape: f32[32,32], index: 4, kind: input, shape index: {}]   ;;  %s2726_s5 = inlined_call_operand.vmem [shape: f32[1,32], index: 5, kind: input, shape index: {}]   ;;  %s2727_s6 = inlined_call_operand.hbm [shape: f32[2,16,32], index: 6, kind: output, shape index: {}]  }
   0x1   :  { %2735 = sst [smem:[#allocation18_spill]] %s2721_s0 }
   0x2   :  { %2736 = sst [smem:[#allocation19_spill]] %s2723_s2 }
   0x3   :  { %2737 = sst [smem:[#allocation20_spill]] %s2724_s3 }
   0x4   :  { %2738 = sst [smem:[#allocation21_spill]] %s2725_s4 }
   0x5   :  { %11 = vsyncpa [#allocation3], 0 }
   0x6   :  { %13 = vsyncpa [#allocation3 + $0x1], 0 }
   0x7   :  { %14 = vsyncpa [#allocation6], 0 }
   0x8   :  { %16 = vsyncpa [#allocation6 + $0x1], 0 }
   0x9   :  { %17 = vsyncpa [#allocation9], 0 }
   0xa   :  { %18 = vsyncpa [#allocation4], 0 }
   0xb   :  { %20 = vsyncpa [#allocation4 + $0x1], 0  ;;  %s2292_s21 = smov 0   ;;  %s2294_s22 = smov 0  }
   0xc   :  { %s2296_s23 = smov 0   ;;  %s2298_s24 = smov 0  }
   0xd LB: > { %s2313_s25 = sadd.s32 4294967295, %s2236_s24   ;;  %s1591_s26 = sadd.s32 4294967294, %s2236_s24   ;;  %s2236_s24 = sphi %s2298_s24, %s2768_s24   ;;  %s2232_s23 = sphi %s2296_s23, %s2767_s23   ;;  %s2228_s22 = sphi %s2294_s22, %s2766_s22   ;;  %s2224_s21 = sphi %s2292_s21, %s2765_s21  }
   0xe   : > { %p46_p0 = scmp.ne.s32.totalorder %s2228_s22, %s2224_s21  ;;  %p2728_p1 = scmp.eq.s32.totalorder %s2313_s25, 0 }
   0xf   : > { %p186_p3 = scmp.eq.s32.totalorder %s1591_s26, 1  ;;  %p1592_p5 = scmp.ge.s32.totalorder %s2236_s24, 1 }
  0x10   : > { %p2322_p4 = por %p2728_p1, %p46_p0  ;;  %p193_p7 = scmp.lt.s32.totalorder %s2236_s24, 3 }
  0x11   : > { %p2327_p6 = por %p186_p3, %p46_p0  ;;  %s2238_s30 = smov [#allocation7]  }
  0x12   : > { %s2739_s27 = scalar_select %p2322_p4, 1, 0 }
  0x13   : > { %s2740_s28 = scalar_select %p2327_p6, 1, 0 }
  0x14   : > { %p2332_p8 = pnand %p1592_p5, %p193_p7  ;;  %s205_s7 = sshll.u32 %s2238_s30, 4  ;;  %s2336_s7 = int_to_ptr.vmem [resolvable:$true] %s205_s7 }
  0x15   : > { %s2239_s9 = smov [#allocation8]   ;;  %s2240_s11 = smov [#allocation10]  }
  0x16   : > { %s2741_s29 = scalar_select %p2332_p8, 1, 0 }
  0x17   : > { %p1870_p9 = pneg %p2332_p8  ;;  %s218_s10 = sshll.u32 %s2239_s9, 4  ;;  %s2347_s10 = int_to_ptr.vmem [resolvable:$true] %s218_s10 }
  0x18   : > { %s2349_s12 = sshll.u32 %s2240_s11, 4  ;;  %s2743_s2 = sld [smem:[#allocation19_spill]]  ;;  %s232_s12 = int_to_ptr.vmem [resolvable:$true] %s2349_s12 }
  0x19   : > { %p2343_p11 = pnand %p1870_p9, %p2728_p1 }
  0x1b   : > { %p2359_p13 = pneg %p2343_p11 }
  0x1e   : > { %s2014_s15 = scalar_lea.hbm %s2743_s2, 512 }
  0x1f   : > { %p2015_p12 = scmp.ne.s32.totalorder %s2743_s2, %s2014_s15  ;;  %p2021_p5 = scmp.lt.u32.totalorder %s2014_s15, %s2743_s2 }
  0x21   : > { %p2017_p0 = pnand %p2359_p13, %p2015_p12 }
  0x23   : > { %p2018_p3 = pneg %p2017_p0 }
  0x25   : > { %p2023_p7 = pnand %p2021_p5, %p2018_p3 }
  0x27   : > { %2026 = shalt.err (!%p2023_p7)
}
  0x28   : > { %s2027_s26 = scalar_lea.vmem %s2336_s7, 512  ;;  %p2035_p2 = scmp.lt.s32.totalorder %s2336_s7, %s2336_s7 }
  0x29   : > { %p2028_p9 = scmp.ne.s32.totalorder %s2336_s7, %s2027_s26  ;;  %p2036_p6 = scmp.lt.s32.totalorder %s2027_s26, %s2027_s26 }
  0x2b   : > { %p2030_p10 = pnand %p2028_p9, %p2359_p13  ;;  %p2037_p12 = por %p2036_p6, %p2035_p2 }
  0x2d   : > { %p2031_p1 = pneg %p2030_p10 }
  0x2f   : > { %p2038_p0 = pnand %p2037_p12, %p2031_p1 }
  0x31   : > { %2041 = shalt.err (!%p2038_p0)
}
  0x32   : > { %s2731_s30 = smov 128   ;;  %s2733_s9 = smov 8  }
  0x33   : > { %1873 = dma.hbm_to_vmem [thread:$0]  (!%p2343_p11), %s2743_s2, 512, %s2336_s7, [#allocation6], %s2731_s30, %s2731_s30, %s2733_s9  }
  0x34   : > { %s2745_s3 = sld [smem:[#allocation20_spill]] }
  0x3a   : > { %s2042_s16 = scalar_lea.hbm %s2745_s3, 512 }
  0x3b   : > { %p2043_p1 = scmp.ne.s32.totalorder %s2745_s3, %s2042_s16  ;;  %p2049_p10 = scmp.lt.u32.totalorder %s2042_s16, %s2745_s3 }
  0x3d   : > { %p2045_p2 = pnand %p2043_p1, %p2359_p13 }
  0x3f   : > { %p2046_p6 = pneg %p2045_p2 }
  0x41   : > { %p2051_p3 = pnand %p2049_p10, %p2046_p6 }
  0x43   : > { %2054 = shalt.err (!%p2051_p3)
}
  0x44   : > { %s2055_s7 = scalar_lea.vmem %s2347_s10, 512  ;;  %p2063_p12 = scmp.lt.s32.totalorder %s2347_s10, %s2347_s10 }
  0x45   : > { %p2056_p5 = scmp.ne.s32.totalorder %s2347_s10, %s2055_s7  ;;  %p2064_p0 = scmp.lt.s32.totalorder %s2055_s7, %s2055_s7 }
  0x47   : > { %p2058_p7 = pnand %p2056_p5, %p2359_p13  ;;  %p2065_p1 = por %p2064_p0, %p2063_p12 }
  0x49   : > { %p2059_p9 = pneg %p2058_p7 }
  0x4b   : > { %p2066_p2 = pnand %p2065_p1, %p2059_p9 }
  0x4d   : > { %2069 = shalt.err (!%p2066_p2)
}
  0x4e   : > { %1876 = dma.hbm_to_vmem [thread:$0]  (!%p2343_p11), %s2745_s3, 512, %s2347_s10, [#allocation9], %s2731_s30, %s2731_s30, %s2733_s9  }
  0x4f   : > { %s2746_s4 = sld [smem:[#allocation21_spill]] }
  0x55   : > { %s2070_s16 = scalar_lea.hbm %s2746_s4, 512 }
  0x56   : > { %p2071_p6 = scmp.ne.s32.totalorder %s2746_s4, %s2070_s16  ;;  %p2077_p5 = scmp.lt.u32.totalorder %s2070_s16, %s2746_s4 }
  0x58   : > { %p2073_p10 = pnand %p2071_p6, %p2359_p13 }
  0x5a   : > { %p2074_p3 = pneg %p2073_p10 }
  0x5c   : > { %p2079_p7 = pnand %p2077_p5, %p2074_p3 }
  0x5e   : > { %2082 = shalt.err (!%p2079_p7)
}
  0x5f   : > { %s2083_s7 = scalar_lea.vmem %s232_s12, 512  ;;  %p2091_p1 = scmp.lt.s32.totalorder %s232_s12, %s232_s12 }
  0x60   : > { %p2084_p9 = scmp.ne.s32.totalorder %s232_s12, %s2083_s7  ;;  %p2092_p2 = scmp.lt.s32.totalorder %s2083_s7, %s2083_s7 }
  0x62   : > { %p2086_p12 = pnand %p2084_p9, %p2359_p13  ;;  %p2093_p4 = por %p2092_p2, %p2091_p1 }
  0x64   : > { %p2087_p0 = pneg %p2086_p12 }
  0x66   : > { %p2094_p8 = pnand %p2093_p4, %p2087_p0 }
  0x68   : > { %2097 = shalt.err (!%p2094_p8)
}
  0x69   : > { %1879 = dma.hbm_to_vmem [thread:$0]  (!%p2343_p11), %s2746_s4, 512, %s232_s12, [#allocation9], %s2731_s30, %s2731_s30, %s2733_s9  }
  0x6a   : > { %s2432_s18 = sadd.s32 1, %s2236_s24   ;;  %s33_s13 = sadd.s32 1, %s2232_s23 }
  0x6b   : > { %s30_s8 = ssub.s32 %s2236_s24, %s2432_s18  ;;  %p40_p8 = scmp.ne.s32.totalorder %s2232_s23, %s2228_s22 }
  0x6c   : > { %p31_p4 = scmp.eq.s32.totalorder %s30_s8, 0  ;;  %p41_p13 = scmp.eq.s32.totalorder %s2236_s24, 0 }
  0x6d   : > { %p1894_p6 = scmp.lt.s32.totalorder %s2236_s24, 2  ;;  %p2748_p3 = scmp.eq.s32.totalorder %s2313_s25, 1 }
  0x6e   : > { %s2442_s14 = scalar_select %p31_p4, %s2232_s23, %s33_s13  }
  0x6f   : > { %p42_p10 = por %p41_p13, %p40_p8  ;;  %p2446_p5 = por %p2748_p3, %p40_p8 }
  0x70   : > { %2747 = sst [smem:[#allocation17_spill]] %s2442_s14  ;;  %s248_s16 = sand.u32 1, %s2232_s23  }
  0x71   : > { %s1646_s17 = sshll.u32 %s2236_s24, 8  ;;  %s2452_s12 = sshll.u32 %s248_s16, 4 }
  0x72   : > { %s2750_s0 = sld [smem:[#allocation18_spill]]  ;;  %s252_s7 = scalar_lea.vmem [#allocation2], %s2452_s12 }
  0x73   : > { %s259_s10 = sshll.u32 %s252_s7, 4  ;;  %p2460_p11 = pnand %p1894_p6, %p42_p10  ;;  %s2464_s10 = int_to_ptr.vmem [resolvable:$true] %s259_s10 }
  0x74   : > { %s2469_s19 = scalar_lea.hbm %s2722_s1, %s1646_s17  ;;  %s2471_s20 = scalar_lea.sflag [#allocation3], %s248_s16 }
  0x75   : > { %p2100_p9 = pneg %p2460_p11 }
  0x78   : > { %s2457_s26 = scalar_lea.hbm %s2750_s0, %s1646_s17  ;;  %s2103_s2 = scalar_lea.hbm %s2750_s0, 512 }
  0x79   : > { %s2098_s30 = scalar_lea.hbm %s2457_s26, 256  ;;  %p2104_p1 = scmp.lt.u32.totalorder %s2457_s26, %s2750_s0 }
  0x7a   : > { %p2099_p7 = scmp.ne.s32.totalorder %s2457_s26, %s2098_s30  ;;  %p2105_p2 = scmp.lt.u32.totalorder %s2103_s2, %s2098_s30 }
  0x7b   : > { %p2107_p8 = scmp.lt.u32.totalorder %s2098_s30, %s2457_s26 }
  0x7c   : > { %p2101_p12 = pnand %p2100_p9, %p2099_p7  ;;  %p2106_p4 = por %p2105_p2, %p2104_p1 }
  0x7e   : > { %p2102_p0 = pneg %p2101_p12  ;;  %p2108_p13 = por %p2107_p8, %p2106_p4 }
  0x80   : > { %p2109_p6 = pnand %p2108_p13, %p2102_p0 }
  0x82   : > { %2112 = shalt.err (!%p2109_p6)
}
  0x83   : > { %s2113_s16 = scalar_lea.vmem %s2464_s10, 256  ;;  %s2243_s9 = smov [#allocation2]  }
  0x84   : > { %p2114_p10 = scmp.ne.s32.totalorder %s2464_s10, %s2113_s16  ;;  %s2118_s17 = sshll.u32 %s2243_s9, 4  ;;  %s2119_s17 = int_to_ptr.vmem [resolvable:$false] %s2118_s17 }
  0x85   : > { %s2120_s3 = scalar_lea.vmem %s2119_s17, 512  ;;  %p2121_p12 = scmp.lt.s32.totalorder %s2464_s10, %s2119_s17 }
  0x86   : > { %p2116_p3 = pnand %p2114_p10, %p2100_p9  ;;  %p2122_p1 = scmp.lt.s32.totalorder %s2120_s3, %s2113_s16 }
  0x88   : > { %p2117_p7 = pneg %p2116_p3  ;;  %p2123_p2 = por %p2122_p1, %p2121_p12 }
  0x8a   : > { %p2124_p4 = pnand %p2123_p2, %p2117_p7 }
  0x8c   : > { %2127 = shalt.err (!%p2124_p4)
}
  0x8d   : > { %s2752_s2 = smov 8   ;;  %s2753_s4 = smov 128  }
  0x8e   : > { %1883 = dma.hbm_to_vmem [thread:$0]  (!%p2460_p11), %s2457_s26, 256, %s2464_s10, %s2471_s20, %s2753_s4, %s2753_s4, %s2752_s2  }
  0x8f   : > { %s273_s30 = scalar_lea.vmem [#allocation5], %s2452_s12  ;;  %s269_s13 = sand.u32 1, %s2236_s24  }
  0x90   : > { %s280_s8 = sshll.u32 %s273_s30, 4  ;;  %s2506_s7 = scalar_lea.sflag [#allocation6], %s269_s13  ;;  %s2504_s8 = int_to_ptr.vmem [resolvable:$true] %s280_s8 }
  0x91   : > { %s2128_s16 = scalar_lea.hbm %s2469_s19, 256  ;;  %s2133_s3 = scalar_lea.hbm %s2722_s1, 512 }
  0x92   : > { %p2129_p0 = scmp.ne.s32.totalorder %s2469_s19, %s2128_s16  ;;  %p2134_p6 = scmp.lt.u32.totalorder %s2469_s19, %s2722_s1 }
  0x93   : > { %p2135_p10 = scmp.lt.u32.totalorder %s2133_s3, %s2128_s16  ;;  %p2137_p7 = scmp.lt.u32.totalorder %s2128_s16, %s2469_s19 }
  0x94   : > { %p2131_p8 = pnand %p2129_p0, %p2100_p9 }
  0x95   : > { %p2136_p3 = por %p2135_p10, %p2134_p6 }
  0x96   : > { %p2132_p13 = pneg %p2131_p8 }
  0x97   : > { %p2138_p12 = por %p2137_p7, %p2136_p3 }
  0x99   : > { %p2139_p1 = pnand %p2138_p12, %p2132_p13 }
  0x9b   : > { %2142 = shalt.err (!%p2139_p1)
}
  0x9c   : > { %s2143_s12 = scalar_lea.vmem %s2504_s8, 256  ;;  %s2244_s26 = smov [#allocation5]  }
  0x9d   : > { %p2144_p2 = scmp.ne.s32.totalorder %s2504_s8, %s2143_s12  ;;  %s2148_s10 = sshll.u32 %s2244_s26, 4  ;;  %s2149_s10 = int_to_ptr.vmem [resolvable:$false] %s2148_s10 }
  0x9e   : > { %s2150_s0 = scalar_lea.vmem %s2149_s10, 512  ;;  %p2151_p8 = scmp.lt.s32.totalorder %s2504_s8, %s2149_s10 }
  0x9f   : > { %p2146_p4 = pnand %p2144_p2, %p2100_p9  ;;  %p2152_p6 = scmp.lt.s32.totalorder %s2150_s0, %s2143_s12 }
  0xa1   : > { %p2147_p0 = pneg %p2146_p4  ;;  %p2153_p10 = por %p2152_p6, %p2151_p8 }
  0xa3   : > { %p2154_p3 = pnand %p2153_p10, %p2147_p0 }
  0xa5   : > { %2157 = shalt.err (!%p2154_p3)
}
  0xa6   : > { %1886 = dma.hbm_to_vmem [thread:$0]  (!%p2460_p11), %s2469_s19, 256, %s2504_s8, %s2506_s7, %s2753_s4, %s2753_s4, %s2752_s2  }
  0xa7   : > { %p2754_p9 = scmp.ne.s32.totalorder %s2741_s29, 0 }
  0xa8   : > { %s2538_s14 = sand.u32 (!%p2754_p9), 1, %s2228_s22   ;;  %p2755_p13 = scmp.ne.s32.totalorder (!%p2754_p9), %s2739_s27, 0 }
  0xa9   : > { %292 = sbr.rel (%p2754_p9) target bundleno = 2657 (0xa61), region = 44  ;;  %s2541_s20 = sshll.u32 (!%p2754_p9), %s2538_s14, 4 }
  0xaa   : > { %s295_s11 = scalar_lea.sflag (!%p2754_p9), [#allocation3], %s2538_s14  ;;  %s298_s30 = scalar_lea.vmem (!%p2754_p9), [#allocation2], %s2541_s20 }
  0xb0   : > { %2203 = dma.done.wait (%p2755_p13), %s295_s11, 256  }
  0xb1   : > { %2205 = vsyncadd (%p2755_p13), %s295_s11, 4294967040  ;;  %s303_s29 = sand.u32 1, %s2313_s25   ;;  %s307_s2 = scalar_lea.vmem [#allocation5], %s2541_s20 }
  0xb2   : > { %s304_s19 = scalar_lea.sflag [#allocation6], %s303_s29 }
  0xb3   : > { %2207 = dma.done.wait (%p2755_p13), %s304_s19, 256  }
  0xb4   : > { %2209 = vsyncadd (%p2755_p13), %s304_s19, 4294967040  ;;  %p2756_p11 = scmp.eq.s32.totalorder %s2313_s25, 0 }
  0xb6   : > { %2211 = dma.done.wait (%p2756_p11), [#allocation6], 512   ;;  %p2757_p7 = pmov %p2756_p11 }
  0xb8   : > { %2213 = vsyncadd (%p2757_p7), [#allocation6], 4294966784  ;;  %p2758_p12 = pmov %p2757_p7 }
  0xb9   : > { %p2759_p1 = pmov %p2757_p7 }
  0xba   : > { %2215 = dma.done.wait (%p2758_p12), [#allocation9], 1024  }
  0xbb   : > { %2217 = vsyncadd (%p2759_p1), [#allocation9], 4294966272  ;;  %v443_v0 = vld [vmem:[#allocation8] sm:$0xff]  ;;  %v444_v1 = vld [vmem:[#allocation8 + $0x8] sm:$0xff]  ;;  %vm361_vm0 = vcmask 261120   ;;  %vm530_vm1 = vcmask 64512  }
  0xbc   : > { %v445_v2 = vld [vmem:[#allocation8 + $0x10] sm:$0xff]  ;;  %v1796_v3 = vpack.c.bf16 %v444_v1, %v443_v0  ;;  %v446_v4 = vld [vmem:[#allocation8 + $0x18] sm:$0xff]  ;;  %v357_v5 = vld [vmem:[#allocation7] sm:$0xff]  ;;  %s2245_s27 = smov 120   ;;  %vm618_vm3 = vcmask 130048   ;;  %s2246_s4 = smov 96  }
  0xbd   : > { %v358_v6 = vld [vmem:[#allocation7 + $0x8] sm:$0xff]  ;;  %v1800_v7 = vpack.c.bf16 %v446_v4, %v445_v2  ;;  %v355_v9 = vld [vmem:[%s307_s2] sm:$0xff]  ;;  %v360_v11 = vld [vmem:[#allocation7 + $0x18] sm:$0xff]  ;;  %s2247_s8 = smov 112   ;;  %s2248_s13 = smov 88   ;;  %vm1356_vm4 = vcmask 195584  }
  0xbe   : > { %v1788_v8 = vpack.c.bf16 %v358_v6, %v357_v5  ;;  %v359_v10 = vld [vmem:[#allocation7 + $0x10] sm:$0xff]  ;;  %1797 = vmatprep.subr.bf16.mxu1 %v1796_v3  ;;  %1718 = vmatprep.mubr.msk.f32.mxu1 %vm361_vm0, %v355_v9  ;;  %v356_v14 = vld [vmem:[%s307_s2 + $0x8] sm:$0xff]  ;;  %vm2577_vm2 = vmpackc.low %vm530_vm1, %vm530_vm1  ;;  %s2249_s7 = smov 80   ;;  %s2250_s16 = smov 104  }
  0xbf   : > { %v353_v12 = vld [vmem:[%s298_s30] sm:$0xff]  ;;  %1799 = vmatpush3.bf16.msra.mxu1 %v1796_v3  ;;  %v1792_v13 = vpack.c.bf16 %v360_v11, %v359_v10  ;;  %v354_v15 = vld [vmem:[%s298_s30 + $0x8] sm:$0xff]  ;;  %s2251_s9 = smov 8   ;;  %s2252_s17 = smov 16  }
  0xc0   : > { %1789 = vmatprep.subr.bf16.mxu0 %v1788_v8  ;;  %1801 = vmatprep.subr.bf16.mxu1 %v1800_v7  ;;  %s2253_s3 = smov 72   ;;  %s2254_s12 = smov 24  }
  0xc1   : > { %1791 = vmatpush3.bf16.msra.mxu0 %v1788_v8  ;;  %1707 = vmatprep.mubr.msk.f32.mxu0 %vm361_vm0, %v353_v12  ;;  %s352_s0 = scalar_lea.vmem [#allocation11], %s2541_s20  ;;  %s1648_s30 = sshll.u32 %s2313_s25, 8 }
  0xc2   : > { %1793 = vmatprep.subr.bf16.mxu0 %v1792_v13  ;;  %s1467_s11 = sshll.u32 %s352_s0, 4  ;;  %s2674_s2 = scalar_lea.hbm %s2727_s6, %s1648_s30  ;;  %s2669_s11 = int_to_ptr.vmem [resolvable:$true] %s1467_s11 }
  0xc3   : > { %1803 = vmatpush3.bf16.msra.mxu1 %v1800_v7  ;;  %s1454_s20 = scalar_lea.sflag [#allocation4], %s2538_s14  ;;  %s2158_s25 = scalar_lea.vmem %s2669_s11, 256 }
  0xc4   : > { %p2159_p2 = scmp.ne.s32.totalorder %s2669_s11, %s2158_s25 }
  0xc5   : > { %1795 = vmatpush3.bf16.msra.mxu0 %v1792_v13 }
  0xc6   : > { %1719 = vmatmul.mubr.msk.f32.vlgmr.msra.gmra.mrb[0].mxu1 %vm361_vm0, %v356_v14  ;;  %p2160_p4 = pnand %p2159_p2, %p2446_p5 }
  0xc8   : > { %1708 = vmatmul.mubr.msk.f32.vlgmr.msra.gmra.mrb[0].mxu0 %vm361_vm0, %v354_v15  ;;  %p2161_p0 = pneg %p2160_p4 }
 0x199   : > { %v1720_v16 = vpop.f32.mrb[0].mxu1 }
 0x19a   : > { %v519_v17 = vpop.f32.mrb[1].mxu1 }
 0x19b   : > { %v1709_v19 = vpop.f32.mrb[0].mxu0  ;;  %v2581_v20 = vpack.i.bf16 %v1720_v16, %v519_v17  ;;  %v1804_v21 = vpack.c.bf16 %v1720_v16, %v519_v17 }
 0x19c   : > { %v434_v22 = vpop.f32.mrb[1].mxu0  ;;  %v2593_v24 = vmul.f32 0.35355338, %v1709_v19 }
 0x19d   : > { %v2583_v23 = vmul.f32 0.35355338, %v434_v22  ;;  %1953 = vrot.lane.b32.xlu1 %v2581_v20, %s2245_s27  ;;  %1806 = vmatprep.subr.msk.bf16.mxu0 %vm2577_vm2, %v1804_v21 }
 0x19e   : > { %1809 = vmatpush3.bf16.xpose.msk.msra.mxu0 %vm2577_vm2, %v1804_v21 }
 0x19f   : > { %1725 = vmatprep.mubr.msk.f32.mxu0 %vm530_vm1, %v2583_v23 }
 0x1a1   : > { %728 = vrot.lane.b32.xlu1 %v2583_v23, %s2245_s27 }
 0x1a5   : > { %1726 = vmatmul.mubr.msk.f32.vlgmr.msra.gmra.mrb[2].mxu0 %vm530_vm1, %v2593_v24 }
 0x20f   : > { %v1954_v32 = vpop.permute.xlu1 %1953 }
 0x210   : > { %v1956_v36 = vunpack.i.h.bf16 %v1954_v32  ;;  %v1955_v38 = vunpack.i.l.bf16 %v1954_v32 }
 0x212   : > { %v1814_v42 = vpack.c.bf16 %v1956_v36, %v1955_v38 }
 0x213   : > { %v729_v47 = vpop.permute.xlu1 %728 }
 0x278   : > { %v1727_v25 = vpop.f32.mrb[2].mxu0 }
 0x279   : > { %v609_v26 = vpop.f32.mrb[3].mxu0  ;;  %v622_v28 = vsel %vm618_vm3, %v1727_v25, -inf }
 0x27a   : > { %v619_v27 = vsel %vm618_vm3, %v609_v26, -inf }
 0x27b   : > { %620 = vmax.xlane.f32.xlu0 %v619_v27 }
 0x27f   : > { %623 = vmax.xlane.f32.xlu0 %v622_v28 }
 0x295   : > { %1948 = vrot.lane.b32.xlu0 %v2581_v20, %s2246_s4 }
 0x299   : > { %730 = vrot.lane.b32.xlu0 %v2593_v24, %s2245_s27  ;;  %s2255_s27 = smov [#allocation11]  }
 0x29a   : > { %s2162_s4 = sshll.u32 %s2255_s27, 4  ;;  %s2163_s4 = int_to_ptr.vmem [resolvable:$false] %s2162_s4 }
 0x29b   : > { %p2165_p8 = scmp.lt.s32.totalorder %s2669_s11, %s2163_s4 }
 0x29d   : > { %930 = vrot.lane.b32.xlu0 %v2593_v24, %s2247_s8 }
 0x308   : > { %v621_v29 = vpop.xlane.xlu0 %620 }
 0x309   : > { %v625_v30 = vsub.f32 %v609_v26, %v621_v29 }
 0x30b   : > { %v627_v34 = vmul.f32 1.442695, %v625_v30 }
 0x30c   : > { %v624_v31 = vpop.xlane.xlu0 %623 }
 0x30d   : > { %v626_v33 = vsub.f32 %v1727_v25, %v624_v31 }
 0x30f   : > { %v629_v35 = vmul.f32 1.442695, %v626_v33 }
 0x310   : > { %v1949_v37 = vpop.permute.xlu0 %1948 }
 0x311   : > { %1982 = vpow2.f32 %v629_v35  ;;  %v1951_v39 = vunpack.i.h.bf16 %v1949_v37  ;;  %v1950_v40 = vunpack.i.l.bf16 %v1949_v37 }
 0x312   : > { %1984 = vpow2.f32 %v627_v34 }
 0x313   : > { %v1810_v41 = vpack.c.bf16 %v1951_v39, %v1950_v40 }
 0x314   : > { %v731_v56 = vpop.permute.xlu0 %730 }
 0x315   : > { %1811 = vmatprep.subr.bf16.mxu1 %v1810_v41 }
 0x316   : > { %1813 = vmatpush3.bf16.msra.mxu1 %v1810_v41 }
 0x317   : > { %1816 = vmatprep.subr.msk.bf16.mxu1 %vm2577_vm2, %v1814_v42 }
 0x318   : > { %v931_v60 = vpop.permute.xlu0 %930 }
 0x31b   : > { %v1983_v43 = vpop.eup %1982 }
 0x31c   : > { %v634_v44 = vsel %vm618_vm3, %v1983_v43, 0.0  ;;  %v1985_v45 = vpop.eup %1984 }
 0x31d   : > { %635 = vadd.xlane.f32.xlu1 %v634_v44  ;;  %v631_v46 = vsel %vm618_vm3, %v1985_v45, 0.0 }
 0x321   : > { %632 = vadd.xlane.f32.xlu1 %v631_v46 }
 0x332   : > { %1958 = vrot.lane.b32.xlu1 %v2581_v20, %s2247_s8 }
 0x336   : > { %928 = vrot.lane.b32.xlu1 %v2583_v23, %s2247_s8  ;;  %s2164_s8 = scalar_lea.vmem %s2163_s4, 512 }
 0x337   : > { %p2166_p6 = scmp.lt.s32.totalorder %s2164_s8, %s2158_s25 }
 0x339   : > { %p2167_p10 = por %p2166_p6, %p2165_p8 }
 0x33b   : > { %p2168_p3 = pnand %p2167_p10, %p2161_p0 }
 0x3aa   : > { %v636_v48 = vpop.xlane.xlu1 %635 }
 0x3ab   : > { %1986 = vrcp.f32 %v636_v48 }
 0x3ae   : > { %v633_v49 = vpop.xlane.xlu1 %632 }
 0x3af   : > { %1988 = vrcp.f32 %v633_v49 }
 0x3b2   : > { %v1959_v50 = vpop.permute.xlu1 %1958 }
 0x3b3   : > { %v1961_v51 = vunpack.i.h.bf16 %v1959_v50  ;;  %v1960_v52 = vunpack.i.l.bf16 %v1959_v50 }
 0x3b5   : > { %v1824_v53 = vpack.c.bf16 %v1961_v51, %v1960_v52  ;;  %v1987_v55 = vpop.eup %1986 }
 0x3b6   : > { %v929_v54 = vpop.permute.xlu1 %928  ;;  %v640_v59 = vmul.f32 %v1987_v55, %v1983_v43 }
 0x3b7   : > { %1826 = vmatprep.subr.msk.bf16.mxu0 %vm2577_vm2, %v1824_v53  ;;  %1753 = vmatprep.mubr.msk.f32.mxu0 %vm530_vm1, %v929_v54 }
 0x3b8   : > { %1829 = vmatpush3.bf16.xpose.msk.msra.mxu0 %vm2577_vm2, %v1824_v53 }
 0x3b9   : > { %v1989_v57 = vpop.eup %1988 }
 0x3ba   : > { %v639_v58 = vmul.f32 %v1989_v57, %v1985_v45 }
 0x3bc   : > { %1732 = vmatprep.mubr.msk.f32.mxu1 %vm618_vm3, %v639_v58 }
 0x3bd   : > { %1733 = vmatmul.mubr.msk.f32.vlgmr.msra.gmra.mrb[2].mxu1 %vm618_vm3, %v640_v59 }
 0x3be   : > { %1819 = vmatpush3.bf16.xpose.msk.msra.mxu1 %vm2577_vm2, %v1814_v42  ;;  %1739 = vmatprep.mubr.msk.f32.mxu1 %vm530_vm1, %v729_v47 }
 0x3bf   : > { %1754 = vmatmul.mubr.msk.f32.vlgmr.msra.gmra.mrb[4].mxu0 %vm530_vm1, %v931_v60 }
 0x3c5   : > { %1740 = vmatmul.mubr.msk.f32.vlgmr.msra.gmra.mrb[4].mxu1 %vm530_vm1, %v731_v56 }
 0x490   : > { %v2620_v61 = vpop.f32.mrb[2].mxu1 }
 0x491   : > { %v2622_v62 = vpop.f32.mrb[3].mxu1 }
 0x492   : > { %v1755_v63 = vpop.f32.mrb[4].mxu0 }
 0x493   : > { %v1010_v0 = vpop.f32.mrb[5].mxu0  ;;  %v1022_v6 = vsel %vm618_vm3, %v1755_v63, -inf }
 0x494   : > { %v1019_v5 = vsel %vm618_vm3, %v1010_v0, -inf }
 0x498   : > { %v1741_v1 = vpop.f32.mrb[4].mxu1 }
 0x499   : > { %v810_v2 = vpop.f32.mrb[5].mxu1  ;;  %v822_v3 = vsel %vm618_vm3, %v1741_v1, -inf }
 0x49a   : > { %823 = vmax.xlane.f32.xlu0 %v822_v3  ;;  %v819_v4 = vsel %vm618_vm3, %v810_v2, -inf }
 0x49b   : > { %820 = vmax.xlane.f32.xlu1 %v819_v4 }
 0x49e   : > { %1020 = vmax.xlane.f32.xlu0 %v1019_v5 }
 0x4a2   : > { %1023 = vmax.xlane.f32.xlu0 %v1022_v6 }
 0x527   : > { %v824_v7 = vpop.xlane.xlu0 %823 }
 0x528   : > { %v826_v10 = vsub.f32 %v1741_v1, %v824_v7  ;;  %v821_v26 = vpop.xlane.xlu1 %820 }
 0x529   : > { %v825_v27 = vsub.f32 %v810_v2, %v821_v26 }
 0x52a   : > { %v829_v14 = vmul.f32 1.442695, %v826_v10 }
 0x52b   : > { %v1021_v8 = vpop.xlane.xlu0 %1020  ;;  %v827_v28 = vmul.f32 1.442695, %v825_v27  ;;  %v1362_v27 = vld [vmem:[#allocation10 + $0x18] sm:$0xff] }
 0x52c   : > { %v1025_v9 = vsub.f32 %v1010_v0, %v1021_v8 }
 0x52e   : > { %v1027_v11 = vmul.f32 1.442695, %v1025_v9 }
 0x52f   : > { %v1024_v12 = vpop.xlane.xlu0 %1023 }
 0x530   : > { %1990 = vpow2.f32 %v1027_v11  ;;  %v1026_v13 = vsub.f32 %v1755_v63, %v1024_v12 }
 0x532   : > { %v1029_v15 = vmul.f32 1.442695, %v1026_v13 }
 0x534   : > { %1992 = vpow2.f32 %v1029_v15 }
 0x535   : > { %1994 = vpow2.f32 %v829_v14 }
 0x536   : > { %1996 = vpow2.f32 %v827_v28 }
 0x53a   : > { %v1991_v16 = vpop.eup %1990 }
 0x53b   : > { %v1031_v17 = vsel %vm618_vm3, %v1991_v16, 0.0 }
 0x53c   : > { %1032 = vadd.xlane.f32.xlu1 %v1031_v17 }
 0x53e   : > { %v1993_v19 = vpop.eup %1992 }
 0x53f   : > { %v1034_v21 = vsel %vm618_vm3, %v1993_v19, 0.0  ;;  %v1995_v22 = vpop.eup %1994 }
 0x540   : > { %1035 = vadd.xlane.f32.xlu0 %v1034_v21  ;;  %v834_v25 = vsel %vm618_vm3, %v1995_v22, 0.0  ;;  %v1997_v29 = vpop.eup %1996 }
 0x541   : > { %v831_v30 = vsel %vm618_vm3, %v1997_v29, 0.0 }
 0x544   : > { %835 = vadd.xlane.f32.xlu0 %v834_v25  ;;  %v1361_v25 = vld [vmem:[#allocation10 + $0x10] sm:$0xff] }
 0x545   : > { %v1848_v28 = vpack.c.bf16 %v1362_v27, %v1361_v25 }
 0x54d   : > { %1963 = vrot.lane.b32.xlu1 %v2581_v20, %s2248_s13 }
 0x55a   : > { %1968 = vrot.lane.b32.xlu0 %v2581_v20, %s2249_s7 }
 0x571   : > { %832 = vadd.xlane.f32.xlu1 %v831_v30 }
 0x582   : > { %1973 = vrot.lane.b32.xlu1 %v2581_v20, %s2250_s16 }
 0x586   : > { %1128 = vrot.lane.b32.xlu1 %v2583_v23, %s2250_s16 }
 0x58a   : > { %1130 = vrot.lane.b32.xlu1 %v2593_v24, %s2250_s16 }
 0x5c9   : > { %v1033_v31 = vpop.xlane.xlu1 %1032 }
 0x5ca   : > { %1998 = vrcp.f32 %v1033_v31 }
 0x5cd   : > { %v1036_v32 = vpop.xlane.xlu0 %1035  ;;  %v1964_v33 = vpop.permute.xlu1 %1963 }
 0x5ce   : > { %v1966_v34 = vunpack.i.h.bf16 %v1964_v33  ;;  %v1965_v35 = vunpack.i.l.bf16 %v1964_v33 }
 0x5d0   : > { %v1820_v36 = vpack.c.bf16 %v1966_v34, %v1965_v35 }
 0x5d1   : > { %v836_v37 = vpop.xlane.xlu0 %835 }
 0x5d2   : > { %1821 = vmatprep.subr.bf16.mxu1 %v1820_v36  ;;  %2000 = vrcp.f32 %v836_v37 }
 0x5d3   : > { %1823 = vmatpush3.bf16.msra.mxu1 %v1820_v36 }
 0x5d4   : > { %v1999_v24 = vpop.eup %1998 }
 0x5d5   : > { %v1969_v38 = vpop.permute.xlu0 %1968  ;;  %v1039_v50 = vmul.f32 %v1999_v24, %v1991_v16 }
 0x5d6   : > { %v1971_v39 = vunpack.i.h.bf16 %v1969_v38  ;;  %v1970_v40 = vunpack.i.l.bf16 %v1969_v38 }
 0x5d8   : > { %v1830_v41 = vpack.c.bf16 %v1971_v39, %v1970_v40 }
 0x5da   : > { %1831 = vmatprep.subr.bf16.mxu1 %v1830_v41 }
 0x5dc   : > { %v2001_v43 = vpop.eup %2000 }
 0x5dd   : > { %v840_v48 = vmul.f32 %v2001_v43, %v1995_v22  ;;  %v1360_v22 = vld [vmem:[#allocation10 + $0x8] sm:$0xff] }
 0x5fe   : > { %v833_v42 = vpop.xlane.xlu1 %832 }
 0x5ff   : > { %2002 = vrcp.f32 %v833_v42 }
 0x600   : > { %2004 = vrcp.f32 %v1036_v32 }
 0x602   : > { %v1974_v23 = vpop.permute.xlu1 %1973 }
 0x603   : > { %v1976_v45 = vunpack.i.h.bf16 %v1974_v23  ;;  %v1975_v46 = vunpack.i.l.bf16 %v1974_v23 }
 0x605   : > { %v1834_v51 = vpack.c.bf16 %v1976_v45, %v1975_v46 }
 0x606   : > { %v1129_v53 = vpop.permute.xlu1 %1128 }
 0x609   : > { %v2003_v44 = vpop.eup %2002 }
 0x60a   : > { %v839_v47 = vmul.f32 %v2003_v44, %v1997_v29  ;;  %v2005_v49 = vpop.eup %2004  ;;  %v1131_v54 = vpop.permute.xlu1 %1130 }
 0x60b   : > { %v1040_v52 = vmul.f32 %v2005_v49, %v1993_v19 }
 0x60c   : > { %1746 = vmatprep.mubr.msk.f32.mxu1 %vm618_vm3, %v839_v47 }
 0x60d   : > { %1747 = vmatmul.mubr.msk.f32.vlgmr.msra.gmra.mrb[6].mxu1 %vm618_vm3, %v840_v48 }
 0x60e   : > { %1833 = vmatpush3.bf16.msra.mxu1 %v1830_v41  ;;  %1760 = vmatprep.mubr.msk.f32.mxu1 %vm618_vm3, %v1039_v50 }
 0x60f   : > { %1836 = vmatprep.subr.msk.bf16.mxu1 %vm2577_vm2, %v1834_v51 }
 0x611   : > { %1761 = vmatmul.mubr.msk.f32.vlgmr.msra.gmra.mrb[8].mxu1 %vm618_vm3, %v1040_v52 }
 0x612   : > { %1767 = vmatprep.mubr.msk.f32.mxu1 %vm530_vm1, %v1129_v53 }
 0x617   : > { %1839 = vmatpush3.bf16.xpose.msk.msra.mxu1 %vm2577_vm2, %v1834_v51 }
 0x61e   : > { %1768 = vmatmul.mubr.msk.f32.vlgmr.msra.gmra.mrb[10].mxu1 %vm530_vm1, %v1131_v54 }
 0x6e0   : > { %v1748_v55 = vpop.f32.mrb[6].mxu1 }
 0x6e1   : > { %v919_v56 = vpop.f32.mrb[7].mxu1 }
 0x6e4   : > { %v1762_v57 = vpop.f32.mrb[8].mxu1 }
 0x6e5   : > { %v1119_v58 = vpop.f32.mrb[9].mxu1 }
 0x6f1   : > { %v1769_v59 = vpop.f32.mrb[10].mxu1 }
 0x6f2   : > { %v1210_v60 = vpop.f32.mrb[11].mxu1  ;;  %v1222_v63 = vsel %vm618_vm3, %v1769_v59, -inf }
 0x6f3   : > { %1223 = vmax.xlane.f32.xlu1 %v1222_v63  ;;  %v1219_v0 = vsel %vm618_vm3, %v1210_v60, -inf }
 0x6f4   : > { %1220 = vmax.xlane.f32.xlu0 %v1219_v0 }
 0x704   : > { %1330 = vrot.lane.b32.xlu1 %v919_v56, %s2251_s9 }
 0x708   : > { %1332 = vrot.lane.b32.xlu1 %v1748_v55, %s2251_s9 }
 0x70c   : > { %1338 = vrot.lane.b32.xlu1 %v1119_v58, %s2252_s17 }
 0x780   : > { %v1224_v18 = vpop.xlane.xlu1 %1223 }
 0x781   : > { %v1226_v1 = vsub.f32 %v1769_v59, %v1224_v18  ;;  %v1221_v2 = vpop.xlane.xlu0 %1220 }
 0x782   : > { %v1225_v3 = vsub.f32 %v1210_v60, %v1221_v2 }
 0x783   : > { %v1229_v4 = vmul.f32 1.442695, %v1226_v1 }
 0x784   : > { %v1227_v5 = vmul.f32 1.442695, %v1225_v3  ;;  %v1331_v31 = vpop.permute.xlu1 %1330 }
 0x785   : > { %2006 = vpow2.f32 %v1229_v4  ;;  %v1352_v35 = vsel %vm530_vm1, %v2622_v62, %v1331_v31  ;;  %v1638_v62 = vld [vmem:[%s2726_s5] ss:$0 sm:$0xff] }
 0x786   : > { %2008 = vpow2.f32 %v1227_v5 }
 0x788   : > { %v1333_v32 = vpop.permute.xlu1 %1332 }
 0x789   : > { %v1353_v37 = vsel %vm530_vm1, %v2620_v61, %v1333_v32 }
 0x78c   : > { %v1339_v34 = vpop.permute.xlu1 %1338 }
 0x78d   : > { %v1354_v38 = vsel %vm618_vm3, %v1352_v35, %v1339_v34 }
 0x78f   : > { %v2007_v6 = vpop.eup %2006 }
 0x790   : > { %v1234_v7 = vsel %vm618_vm3, %v2007_v6, 0.0  ;;  %v2009_v8 = vpop.eup %2008 }
 0x791   : > { %1235 = vadd.xlane.f32.xlu0 %v1234_v7  ;;  %v1231_v9 = vsel %vm618_vm3, %v2009_v8, 0.0 }
 0x795   : > { %1232 = vadd.xlane.f32.xlu0 %v1231_v9 }
 0x7ab   : > { %1978 = vrot.lane.b32.xlu0 %v2581_v20, %s2253_s3  ;;  %v1359_v20 = vld [vmem:[#allocation10] sm:$0xff] }
 0x7ac   : > { %v1844_v26 = vpack.c.bf16 %v1360_v22, %v1359_v20 }
 0x7af   : > { %1340 = vrot.lane.b32.xlu0 %v1762_v57, %s2252_s17 }
 0x81e   : > { %v1236_v10 = vpop.xlane.xlu0 %1235 }
 0x81f   : > { %2010 = vrcp.f32 %v1236_v10 }
 0x822   : > { %v1233_v11 = vpop.xlane.xlu0 %1232 }
 0x823   : > { %2012 = vrcp.f32 %v1233_v11 }
 0x826   : > { %v1979_v12 = vpop.permute.xlu0 %1978 }
 0x827   : > { %v1981_v13 = vunpack.i.h.bf16 %v1979_v12  ;;  %v1980_v14 = vunpack.i.l.bf16 %v1979_v12 }
 0x829   : > { %v1840_v15 = vpack.c.bf16 %v1981_v13, %v1980_v14  ;;  %v2011_v16 = vpop.eup %2010 }
 0x82a   : > { %v1240_v21 = vmul.f32 %v2011_v16, %v2007_v6  ;;  %v1341_v33 = vpop.permute.xlu0 %1340 }
 0x82b   : > { %1841 = vmatprep.subr.bf16.mxu0 %v1840_v15  ;;  %v1355_v40 = vsel %vm618_vm3, %v1353_v37, %v1341_v33 }
 0x82c   : > { %1843 = vmatpush3.bf16.msra.mxu0 %v1840_v15 }
 0x82d   : > { %v2013_v17 = vpop.eup %2012  ;;  %1845 = vmatprep.subr.bf16.mxu0 %v1844_v26 }
 0x82e   : > { %v1239_v19 = vmul.f32 %v2013_v17, %v2009_v8 }
 0x830   : > { %1774 = vmatprep.mubr.msk.f32.mxu0 %vm618_vm3, %v1239_v19 }
 0x831   : > { %1775 = vmatmul.mubr.msk.f32.vlgmr.msra.gmra.mrb[6].mxu0 %vm618_vm3, %v1240_v21 }
 0x832   : > { %1847 = vmatpush3.bf16.msra.mxu0 %v1844_v26 }
 0x833   : > { %1849 = vmatprep.subr.bf16.mxu0 %v1848_v28 }
 0x836   : > { %1851 = vmatpush3.bf16.msra.mxu0 %v1848_v28 }
 0x904   : > { %v1776_v29 = vpop.f32.mrb[6].mxu0 }
 0x905   : > { %1348 = vrot.lane.b32.xlu0 %v1776_v29, %s2254_s12  ;;  %v1319_v30 = vpop.f32.mrb[7].mxu0 }
 0x906   : > { %1346 = vrot.lane.b32.xlu1 %v1319_v30, %s2254_s12 }
 0x977   : > { %v1349_v36 = vpop.permute.xlu0 %1348 }
 0x978   : > { %v1347_v39 = vpop.permute.xlu1 %1346  ;;  %v1358_v42 = vsel %vm1356_vm4, %v1355_v40, %v1349_v36 }
 0x979   : > { %v1357_v41 = vsel %vm1356_vm4, %v1354_v38, %v1347_v39 }
 0x97a   : > { %1785 = vmatprep.mubr.msk.f32.mxu0 %vm361_vm0, %v1357_v41 }
 0x97b   : > { %1786 = vmatmul.mubr.msk.f32.vlgmr.msra.gmra.mrb[8].mxu0 %vm361_vm0, %v1358_v42 }
 0xa4e   : > { %v1787_v61 = vpop.f32.mrb[8].mxu0 }
 0xa4f   : > { %v1448_v23 = vadd.f32 %v1787_v61, %v1638_v62  ;;  %v1442_v24 = vpop.f32.mrb[9].mxu0 }
 0xa50   : > { %v1443_v43 = vadd.f32 %v1638_v62, %v1442_v24 }
 0xa51   : > { %1452 = vst.msk [vmem:[%s352_s0 + $0x8] sm:$0xff] %vm361_vm0, %v1448_v23 }
 0xa52   : > { %1451 = vst.msk [vmem:[%s352_s0] sm:$0xff] %vm361_vm0, %v1443_v43 }
 0xa53   : > { %2171 = shalt.err (!%p2168_p3)
}
 0xa54   : > { %s2172_s13 = scalar_lea.hbm %s2674_s2, 256  ;;  %s2176_s17 = scalar_lea.hbm %s2727_s6, 512 }
 0xa55   : > { %p2173_p9 = scmp.ne.s32.totalorder %s2674_s2, %s2172_s13  ;;  %p2177_p7 = scmp.lt.u32.totalorder %s2674_s2, %s2727_s6 }
 0xa56   : > { %p2178_p12 = scmp.lt.u32.totalorder %s2176_s17, %s2172_s13  ;;  %p2180_p2 = scmp.lt.u32.totalorder %s2172_s13, %s2674_s2 }
 0xa57   : > { %p2174_p13 = pnand %p2173_p9, %p2446_p5 }
 0xa58   : > { %p2179_p1 = por %p2178_p12, %p2177_p7 }
 0xa59   : > { %p2175_p11 = pneg %p2174_p13 }
 0xa5a   : > { %p2181_p4 = por %p2180_p2, %p2179_p1 }
 0xa5c   : > { %p2182_p0 = pnand %p2181_p4, %p2175_p11 }
 0xa5e   : > { %2185 = shalt.err (!%p2182_p0)
}
 0xa5f   : > { %s2256_s26 = smov 128  }
 0xa60   : > { %1868 = dma.vmem_to_hbm [thread:$0]  (%p2446_p5), %s2669_s11, 256, %s2674_s2, %s1454_s20, %s2256_s26, %s2256_s26, %s2251_s9  }
 0xa61 PF: > { %s1482_s10 = sand.u32 1, %s2224_s21   ;;  %p2762_p8 = scmp.ne.s32.totalorder %s2740_s28, 0 }
 0xa62   : > { %p2763_p6 = scmp.ge.s32.totalorder %s2236_s24, 2  ;;  %s1483_s0 = scalar_lea.sflag [#allocation4], %s1482_s10 }
 0xa64   : > { %p1888_p10 = pnand %p2763_p6, %p2762_p8 }
 0xa66   : > { %2219 = dma.done.wait (!%p1888_p10), %s1483_s0, 256  }
 0xa67   : > { %2221 = vsyncadd (!%p1888_p10), %s1483_s0, 4294967040  ;;  %s2764_s15 = sld [smem:[#allocation17_spill]]  ;;  %p23_p3 = scmp.ge.s32.totalorder %s2432_s18, 4  }
 0xa68   : > { %s2765_s21 = smov %s2228_s22  ;;  %s2766_s22 = smov %s2232_s23 }
 0xa69   : > { %s2768_s24 = smov %s2432_s18  ;;  %25 = sbr.rel (!%p23_p3) target bundleno = 13 (0xd), region = 114 }
 0xa6d   : > { %s2767_s23 = smov %s2764_s15 }
 0xa70   :  { %1488 = vsyncpa [#allocation3], 1 }
 0xa71   :  { %1490 = vsyncpa [#allocation3 + $0x1], 1 }
 0xa72   :  { %1491 = vsyncpa [#allocation6], 1 }
 0xa73   :  { %1493 = vsyncpa [#allocation6 + $0x1], 1 }
 0xa74   :  { %1494 = vsyncpa [#allocation9], 1 }
 0xa75   :  { %1495 = vsyncpa [#allocation4], 1 }
 0xa76   :  { %1497 = vsyncpa [#allocation4 + $0x1], 1 }

</bundles_post_ra>
